<compile_context>
chip_gen: v5e
topology: v5e:2x2
jax: 0.10.0
libtpu: 0.0.40
codegen_flags: <defaults>
</compile_context>

<pallas_src>
import functools
import math

import jax
import jax.numpy as jnp
from jax.experimental import pallas as pl
from jax.experimental.pallas import tpu as pltpu


def _modconv1d_kernel(s_ref, dscale_ref, xm_ref, xh_ref, w_ref, b_ref, o_ref,
                      *, K, dilation):
    """One (batch, sequence-tile) grid step.

    s_ref:      (1, Cin, 1)        per-batch channel modulation (compute dtype)
    dscale_ref: (1, Cout, 1)       per-batch scale*demod (f32)
    xm_ref:     (1, Cin, TL)       main input tile (zero-padded x, compute dtype)
    xh_ref:     (1, Cin, HALO_B)   the next HALO_B lanes of x (dilation halo)
    w_ref:      (Cout, K*Cin)      shared conv weight, w_ref[o, t*Cin + c] = w[o, c, t]
    b_ref:      (Cout, 1)          shared conv bias (f32)
    o_ref:      (1, Cout, TL)      output tile
    """
    TL = o_ref.shape[2]

    # Assemble the input window once per tile (lane concat of 128-aligned tiles).
    window = jnp.concatenate([xm_ref[0], xh_ref[0]], axis=-1)      # (Cin, TL+HALO_B)

    # Modulate input channels instead of the weight (one VPU row-scale).
    xs = window * s_ref[0]                                         # (Cin, TL+HALO_B)

    # im2col: stack the K dilated shifts along sublanes -> one fat contraction.
    xcol = jnp.concatenate(
        [xs[:, t * dilation: t * dilation + TL] for t in range(K)], axis=0
    )                                                              # (K*Cin, TL)

    # Single MXU dot, f32 accumulation.
    acc = jnp.dot(w_ref[...], xcol, preferred_element_type=jnp.float32)  # (Cout, TL)

    # Demodulation + equalized-lr scale + bias epilogue (f32), then cast out.
    o_ref[0] = (acc * dscale_ref[0] + b_ref[...]).astype(o_ref.dtype)


def modulated_conv1d(x, style, conv_weight, conv_bias, mod_weight, mod_bias, *,
                     kernel_size, dilation=1, eps=1e-8, demodulate=True,
                     tile_l=1024, mxu_dtype=jnp.float32,
                     vmem_limit_bytes=32 * 1024 * 1024):
    """JAX wrapper for ModulatedConv1d(type='same', pad_type='same').

    x:           (B, Cin, L)      input sequences (NCL)
    style:       (B, S) or None   style vectors
    conv_weight: (Cout, Cin, K)   torch parameter (1, Cout, Cin, K) squeezed
    conv_bias:   (Cout,)
    mod_weight:  (Cin, S)         modulation linear weight
    mod_bias:    (Cin,)           modulation linear bias (init 1.0)
    mxu_dtype:   dtype fed to the MXU (jnp.float32 or jnp.bfloat16)
    """
    B, Cin, L = x.shape
    Cout = conv_weight.shape[0]
    K = kernel_size
    out_dtype = x.dtype

    # Matches the module: fan_in = in_channels * kernel_size ** 2.
    scale = 1.0 / math.sqrt(Cin * K ** 2)
    padding = dilation * (K - 1) // 2                 # pad_type='same'
    halo = dilation * (K - 1)
    Lout = L + 2 * padding - halo                     # == L iff dilation*(K-1) even

    # ---- hoisted style modulation: one small (B,S)x(S,Cin) matmul in XLA ----
    if style is not None:
        s_f32 = (style.astype(jnp.float32) @ mod_weight.astype(jnp.float32).T
                 + mod_bias.astype(jnp.float32)[None, :])            # (B, Cin)
    else:
        s_f32 = jnp.ones((B, Cin), jnp.float32)

    # ---- hoisted demodulation (eps placement identical to the module) ------
    #   sum_{c,t} (scale*w[o,c,t]*s[b,c])^2 = scale^2 * sum_c s^2 * (sum_t w^2)
    if demodulate:
        wsq = jnp.sum(conv_weight.astype(jnp.float32) ** 2, axis=2)  # (Cout, Cin)
        demod = jax.lax.rsqrt((scale ** 2) * (s_f32 ** 2 @ wsq.T) + eps)  # (B, Cout)
        dscale = scale * demod
    else:
        dscale = jnp.full((B, Cout), scale, jnp.float32)

    # ---- operand layouts prepared once in the wrapper ----------------------
    s_in = s_f32.astype(mxu_dtype).reshape(B, Cin, 1)
    dscale_in = dscale.astype(jnp.float32).reshape(B, Cout, 1)
    bias_in = conv_bias.astype(jnp.float32).reshape(Cout, 1)
    # w2[o, t*Cin + c] = w[o, c, t]  (matches the kernel's im2col row order)
    w2 = jnp.transpose(conv_weight, (0, 2, 1)).reshape(Cout, K * Cin).astype(mxu_dtype)

    # ---- sequence tiling: 128-aligned TL, halo via a second aligned view ---
    HALO_B = max(128, ((halo + 127) // 128) * 128)
    TL = max(HALO_B, ((min(max(Lout, 1), tile_l) + 127) // 128) * 128)
    TL = ((TL + HALO_B - 1) // HALO_B) * HALO_B       # TL % HALO_B == 0
    num_tiles = (Lout + TL - 1) // TL
    Lout_pad = num_tiles * TL
    Lxpad = Lout_pad + HALO_B                         # room for the last halo block
    halo_step = TL // HALO_B

    x_pad = jnp.pad(x.astype(mxu_dtype),
                    ((0, 0), (0, 0), (padding, Lxpad - padding - L)))

    kernel = functools.partial(_modconv1d_kernel, K=K, dilation=dilation)

    out_pad = pl.pallas_call(
        kernel,
        out_shape=jax.ShapeDtypeStruct((B, Cout, Lout_pad), out_dtype),
        grid_spec=pltpu.PrefetchScalarGridSpec(
            num_scalar_prefetch=0,
            grid=(B, num_tiles),
            in_specs=[
                pl.BlockSpec((1, Cin, 1), lambda b, j: (b, 0, 0)),       # s (per batch)
                pl.BlockSpec((1, Cout, 1), lambda b, j: (b, 0, 0)),      # scale*demod
                pl.BlockSpec((1, Cin, TL), lambda b, j: (b, 0, j)),      # x main tile
                pl.BlockSpec((1, Cin, HALO_B),                           # x halo tile
                             lambda b, j: (b, 0, (j + 1) * halo_step)),
                pl.BlockSpec((Cout, K * Cin), lambda b, j: (0, 0)),      # conv weight (shared, resident)
                pl.BlockSpec((Cout, 1), lambda b, j: (0, 0)),            # conv bias (shared)
            ],
            out_specs=pl.BlockSpec((1, Cout, TL), lambda b, j: (b, 0, j)),
        ),
        compiler_params=pltpu.CompilerParams(
            dimension_semantics=("parallel", "parallel"),
            vmem_limit_bytes=vmem_limit_bytes),
    )(s_in, dscale_in, x_pad, x_pad, w2, bias_in)

    return out_pad[:, :, :Lout]


def reference_forward(x, style, conv_weight, conv_bias, mod_weight, mod_bias, *,
                      kernel_size, dilation=1, eps=1e-8):
    """Plain-JAX reference mirroring the PyTorch forward semantics."""
    B, Cin, L = x.shape
    Cout = conv_weight.shape[0]
    K = kernel_size
    scale = 1.0 / math.sqrt(Cin * K ** 2)

    s = style @ mod_weight.T + mod_bias[None, :]                  # (B, Cin)
    w = scale * conv_weight[None]                                 # (1, Cout, Cin, K)
    w = w * s[:, None, :, None]                                   # (B, Cout, Cin, K)
    demod = jax.lax.rsqrt(jnp.sum(w * w, axis=(2, 3)) + eps)      # (B, Cout)
    w = w * demod[:, :, None, None]

    padding = dilation * (K - 1) // 2
    x_pad = jnp.pad(x, ((0, 0), (0, 0), (padding, padding)))
    Lout = L + 2 * padding - dilation * (K - 1)

    out = jnp.zeros((B, Cout, Lout), dtype=jnp.float32)
    for t in range(K):
        st = t * dilation
        out = out + jnp.einsum('boc,bcl->bol', w[:, :, :, t],
                               x_pad[:, :, st:st + Lout])
    return out + conv_bias[None, :, None]


if __name__ == "__main__":
    def _rel_max_err(out, ref):
        # Max abs error normalized by the reference's max magnitude; robust to
        # MXU-vs-XLA matmul precision differences while still catching any
        # indexing / halo / im2col logic bug (those give O(1) errors).
        return float(jnp.max(jnp.abs(out - ref)) / (jnp.max(jnp.abs(ref)) + 1e-6))

    keys = jax.random.split(jax.random.PRNGKey(0), 10)

    # --- config 1: module defaults, single sequence tile ---------------------
    B, Cin, Cout, K, S, L, dil = 2, 4, 6, 3, 8, 16, 1
    x = jax.random.normal(keys[0], (B, Cin, L), dtype=jnp.float32)        # (batch, cin, seq_len)
    style = jax.random.normal(keys[1], (B, S), dtype=jnp.float32)         # (batch, style_dim)
    conv_weight = jax.random.normal(keys[2], (Cout, Cin, K), jnp.float32)  # torch (1,Cout,Cin,K) squeezed
    conv_bias = jnp.zeros((Cout,), jnp.float32)                            # torch zeros(Cout)
    mod_weight = jax.random.normal(keys[3], (Cin, S), jnp.float32) / math.sqrt(S)
    mod_bias = jnp.ones((Cin,), jnp.float32)                               # bias_init_val=1.0

    ref = reference_forward(x, style, conv_weight, conv_bias, mod_weight, mod_bias,
                            kernel_size=K, dilation=dil)

    out = modulated_conv1d(x, style, conv_weight, conv_bias, mod_weight, mod_bias,
                           kernel_size=K, dilation=dil, mxu_dtype=jnp.float32)
    out = jax.block_until_ready(out)
    assert out.shape == ref.shape, (out.shape, ref.shape)
    assert _rel_max_err(out, ref) < 5e-3, _rel_max_err(out, ref)

    # bf16 MXU operands, f32 accumulation (v6e/v7x fast path).
    out_bf16 = modulated_conv1d(x, style, conv_weight, conv_bias, mod_weight, mod_bias,
                                kernel_size=K, dilation=dil, mxu_dtype=jnp.bfloat16)
    out_bf16 = jax.block_until_ready(out_bf16)
    assert out_bf16.shape == ref.shape
    assert _rel_max_err(out_bf16, ref) < 3e-2, _rel_max_err(out_bf16, ref)

    # --- config 2: dilation=2 + multiple sequence tiles (exercises the halo) -
    B2, Cin2, Cout2, K2, S2, L2, dil2 = 2, 8, 16, 3, 8, 300, 2
    x2 = jax.random.normal(keys[4], (B2, Cin2, L2), dtype=jnp.float32)
    style2 = jax.random.normal(keys[5], (B2, S2), dtype=jnp.float32)
    conv_weight2 = jax.random.normal(keys[6], (Cout2, Cin2, K2), jnp.float32)
    conv_bias2 = 0.1 * jax.random.normal(keys[7], (Cout2,), jnp.float32)
    mod_weight2 = jax.random.normal(keys[8], (Cin2, S2), jnp.float32) / math.sqrt(S2)
    mod_bias2 = jnp.ones((Cin2,), jnp.float32)

    ref2 = reference_forward(x2, style2, conv_weight2, conv_bias2, mod_weight2, mod_bias2,
                             kernel_size=K2, dilation=dil2)
    out2 = modulated_conv1d(x2, style2, conv_weight2, conv_bias2, mod_weight2, mod_bias2,
                            kernel_size=K2, dilation=dil2, tile_l=128,
                            mxu_dtype=jnp.float32)
    out2 = jax.block_until_ready(out2)
    assert out2.shape == ref2.shape, (out2.shape, ref2.shape)
    assert _rel_max_err(out2, ref2) < 5e-3, _rel_max_err(out2, ref2)

    print("KERNEL_OK")
</pallas_src>

<mosaic_0001>
module attributes {stable_mosaic.version = 11 : i64} {
  func.func @_modconv1d_kernel(%arg0: i32, %arg1: i32, %arg2: memref<1x4x1xf32, #tpu.memory_space<vmem>>, %arg3: memref<1x6x1xf32, #tpu.memory_space<vmem>>, %arg4: memref<1x4x128xf32, #tpu.memory_space<vmem>>, %arg5: memref<1x4x128xf32, #tpu.memory_space<vmem>>, %arg6: memref<6x12xf32, #tpu.memory_space<vmem>>, %arg7: memref<6x1xf32, #tpu.memory_space<vmem>>, %arg8: memref<1x6x128xf32, #tpu.memory_space<vmem>>) attributes {dimension_semantics = [#tpu.dimension_semantics<parallel>, #tpu.dimension_semantics<parallel>], iteration_bounds = array<i64: 2, 1>, scalar_prefetch = 0 : i64, scratch_operands = 0 : i64, tpu.core_type = #tpu.core_type<tc>, window_params = [{transform_indices = @transform_0, window_bounds = array<i64: 1, 4, 1>}, {transform_indices = @transform_1, window_bounds = array<i64: 1, 6, 1>}, {transform_indices = @transform_2, window_bounds = array<i64: 1, 4, 128>}, {transform_indices = @transform_3, window_bounds = array<i64: 1, 4, 128>}, {pipeline_mode = #tpu.pipeline_mode<synchronous>, transform_indices = @transform_4, window_bounds = array<i64: 6, 12>}, {pipeline_mode = #tpu.pipeline_mode<synchronous>, transform_indices = @transform_5, window_bounds = array<i64: 6, 1>}, {transform_indices = @transform_6, window_bounds = array<i64: 1, 6, 128>}]} {
    %c0 = arith.constant 0 : index
    %c0_0 = arith.constant 0 : index
    %c0_1 = arith.constant 0 : index
    %0 = vector.load %arg4[%c0, %c0_0, %c0_1] : memref<1x4x128xf32, #tpu.memory_space<vmem>>, vector<1x4x128xf32>
    %1 = vector.shape_cast %0 : vector<1x4x128xf32> to vector<4x128xf32>
    %c0_2 = arith.constant 0 : index
    %c0_3 = arith.constant 0 : index
    %c0_4 = arith.constant 0 : index
    %2 = vector.load %arg5[%c0_2, %c0_3, %c0_4] : memref<1x4x128xf32, #tpu.memory_space<vmem>>, vector<1x4x128xf32>
    %3 = vector.shape_cast %2 : vector<1x4x128xf32> to vector<4x128xf32>
    %4 = tpu.concatenate %1, %3 in 1 : vector<4x128xf32>, vector<4x128xf32> -> vector<4x256xf32>
    %c0_5 = arith.constant 0 : index
    %c0_6 = arith.constant 0 : index
    %c0_7 = arith.constant 0 : index
    %5 = vector.load %arg2[%c0_5, %c0_6, %c0_7] : memref<1x4x1xf32, #tpu.memory_space<vmem>>, vector<1x4x1xf32>
    %6 = vector.shape_cast %5 : vector<1x4x1xf32> to vector<4x1xf32>
    %7 = vector.broadcast %6 : vector<4x1xf32> to vector<4x256xf32>
    %8 = arith.mulf %4, %7 : vector<4x256xf32>
    %9 = vector.extract_strided_slice %8 {offsets = [0, 0], sizes = [4, 128], strides = [1, 1]} : vector<4x256xf32> to vector<4x128xf32>
    %10 = vector.extract_strided_slice %8 {offsets = [0, 1], sizes = [4, 128], strides = [1, 1]} : vector<4x256xf32> to vector<4x128xf32>
    %11 = vector.extract_strided_slice %8 {offsets = [0, 2], sizes = [4, 128], strides = [1, 1]} : vector<4x256xf32> to vector<4x128xf32>
    %12 = tpu.concatenate %9, %10, %11 in 0 : vector<4x128xf32>, vector<4x128xf32>, vector<4x128xf32> -> vector<12x128xf32>
    %c0_8 = arith.constant 0 : index
    %c0_9 = arith.constant 0 : index
    %13 = vector.load %arg6[%c0_8, %c0_9] : memref<6x12xf32, #tpu.memory_space<vmem>>, vector<6x12xf32>
    %cst = arith.constant dense<0.000000e+00> : vector<6x128xf32>
    %14 = tpu.matmul %13, %12, %cst {dimension_numbers = #tpu.dot_dimension_numbers<[1], [0], [0], [1], [0, 0, 1, 1], [], []>} : vector<6x12xf32>, vector<12x128xf32>, vector<6x128xf32> -> vector<6x128xf32>
    %c0_10 = arith.constant 0 : index
    %c0_11 = arith.constant 0 : index
    %c0_12 = arith.constant 0 : index
    %15 = vector.load %arg3[%c0_10, %c0_11, %c0_12] : memref<1x6x1xf32, #tpu.memory_space<vmem>>, vector<1x6x1xf32>
    %16 = vector.shape_cast %15 : vector<1x6x1xf32> to vector<6x1xf32>
    %17 = vector.broadcast %16 : vector<6x1xf32> to vector<6x128xf32>
    %18 = arith.mulf %14, %17 : vector<6x128xf32>
    %c0_13 = arith.constant 0 : index
    %c0_14 = arith.constant 0 : index
    %19 = vector.load %arg7[%c0_13, %c0_14] : memref<6x1xf32, #tpu.memory_space<vmem>>, vector<6x1xf32>
    %20 = vector.broadcast %19 : vector<6x1xf32> to vector<6x128xf32>
    %21 = arith.addf %18, %20 : vector<6x128xf32>
    %c0_15 = arith.constant 0 : index
    %c0_16 = arith.constant 0 : index
    %c0_17 = arith.constant 0 : index
    %22 = vector.load %arg8[%c0_15, %c0_16, %c0_17] : memref<1x6x128xf32, #tpu.memory_space<vmem>>, vector<1x6x128xf32>
    %23 = vector.shape_cast %22 : vector<1x6x128xf32> to vector<6x128xf32>
    %24 = vector.shape_cast %21 : vector<6x128xf32> to vector<1x6x128xf32>
    tpu.vector_store %arg8[%c0_15, %c0_16, %c0_17], %24 {strides = array<i32>} : memref<1x6x128xf32, #tpu.memory_space<vmem>>, vector<1x6x128xf32>,
    return
  }
  func.func @transform_0(%arg0: i32, %arg1: i32) -> (i32, i32, i32) {
    %c0_i32 = arith.constant 0 : i32
    %c0_i32_0 = arith.constant 0 : i32
    %c0_i32_1 = arith.constant 0 : i32
    return %arg0, %c0_i32, %c0_i32_0 : i32, i32, i32
  }
  func.func @transform_1(%arg0: i32, %arg1: i32) -> (i32, i32, i32) {
    %c0_i32 = arith.constant 0 : i32
    %c0_i32_0 = arith.constant 0 : i32
    %c0_i32_1 = arith.constant 0 : i32
    return %arg0, %c0_i32, %c0_i32_0 : i32, i32, i32
  }
  func.func @transform_2(%arg0: i32, %arg1: i32) -> (i32, i32, i32) {
    %c0_i32 = arith.constant 0 : i32
    %c0_i32_0 = arith.constant 0 : i32
    return %arg0, %c0_i32, %arg1 : i32, i32, i32
  }
  func.func @transform_3(%arg0: i32, %arg1: i32) -> (i32, i32, i32) {
    %c1_i32 = arith.constant 1 : i32
    %0 = arith.addi %arg1, %c1_i32 : i32
    %c1_i32_0 = arith.constant 1 : i32
    %1 = arith.muli %0, %c1_i32_0 : i32
    %c0_i32 = arith.constant 0 : i32
    %c0_i32_1 = arith.constant 0 : i32
    return %arg0, %c0_i32, %1 : i32, i32, i32
  }
  func.func @transform_4(%arg0: i32, %arg1: i32) -> (i32, i32) {
    %c0_i32 = arith.constant 0 : i32
    %c0_i32_0 = arith.constant 0 : i32
    %c0_i32_1 = arith.constant 0 : i32
    return %c0_i32, %c0_i32_0 : i32, i32
  }
  func.func @transform_5(%arg0: i32, %arg1: i32) -> (i32, i32) {
    %c0_i32 = arith.constant 0 : i32
    %c0_i32_0 = arith.constant 0 : i32
    %c0_i32_1 = arith.constant 0 : i32
    return %c0_i32, %c0_i32_0 : i32, i32
  }
  func.func @transform_6(%arg0: i32, %arg1: i32) -> (i32, i32, i32) {
    %c0_i32 = arith.constant 0 : i32
    %c0_i32_0 = arith.constant 0 : i32
    return %arg0, %c0_i32, %arg1 : i32, i32, i32
  }
}

</mosaic_0001>

<bundles_post_ra>
// kernel: tpu_custom_call.1
= control target key start
LH: loop header
LB: loop body
LE: loop exit
PB: predicated region body
PF: predicated region fallthrough
CT: control target
= control target key end

     0   :  { %11 = vsyncpa [#allocation3], 0  ;;  %s735_s21 = smov 0   ;;  %s737_s22 = smov 0   ;;  %s790_s0 = inlined_call_operand.vmem [shape: f32[2,4,1], index: 0, kind: input, shape index: {}]   ;;  %s791_s1 = inlined_call_operand.vmem [shape: f32[2,6,1], index: 1, kind: input, shape index: {}]   ;;  %s792_s2 = inlined_call_operand.vmem [shape: f32[2,4,256], index: 2, kind: input, shape index: {}]   ;;  %s793_s3 = inlined_call_operand.vmem [shape: f32[2,4,256], index: 3, kind: input, shape index: {}]   ;;  %s794_s4 = inlined_call_operand.hbm [shape: f32[6,12], index: 4, kind: input, shape index: {}]   ;;  %s795_s5 = inlined_call_operand.vmem [shape: f32[6,1], index: 5, kind: input, shape index: {}]   ;;  %s796_s6 = inlined_call_operand.vmem [shape: f32[2,6,128], index: 6, kind: output, shape index: {}]  }
   0x1   :  { %s739_s23 = smov 0  }
   0x2 LB: > { %s571_s24 = sadd.s32 4294967295, %s694_s23   ;;  %s29_s25 = sadd.s32 1, %s690_s22  ;;  %s694_s23 = sphi %s739_s23, %s17_s23   ;;  %s690_s22 = sphi %s737_s22, %s798_s22   ;;  %s686_s21 = sphi %s735_s21, %s797_s21  }
   0x3   : > { %p31_p0 = scmp.ge.s32.totalorder %s29_s25, 2  ;;  %p573_p1 = scmp.ge.s32.totalorder %s694_s23, 1 }
   0x4   : > { %p214_p2 = scmp.lt.s32.totalorder %s694_s23, 3  ;;  %p601_p4 = scmp.eq.s32.totalorder %s571_s24, 0 }
   0x5   : > { %s800_s25 = smov (%p31_p0, %s29_s25), 0  ;;  %s226_s28 = sshll.u32 %s794_s4, 4  ;;  %s227_s28 = int_to_ptr.hbm [resolvable:$true] %s226_s28 }
   0x6   : > { %p215_p3 = pnand %p573_p1, %p214_p2  ;;  %s696_s29 = smov [#allocation2]  }
   0x7   : > { %s228_s30 = sshll.u32 %s696_s29, 4  ;;  %s229_s30 = int_to_ptr.vmem [resolvable:$true] %s228_s30 }
   0x8   : > { %p597_p5 = pneg %p215_p3  ;;  %282 = sbr.rel (%p215_p3) target bundleno = 396 (0x18c), region = 44 }
   0xa   : > { %p598_p6 = pnand %p601_p4, %p597_p5 }
   0xc   : > { %600 = dma.hbm_to_vmem [thread:$0]  (!%p598_p6), %s227_s28, 128, %s229_s30, [#allocation3]  }
   0xd   : > { %681 = dma.done.wait (%p601_p4), [#allocation3], 128  }
   0xe   : > { %683 = vsyncadd (%p601_p4), [#allocation3], 4294967168  ;;  %p335_p7 = scmp.lt.s32.totalorder %s686_s21, 1  ;;  %v697_v0 = vmov 0   ;;  %s698_s19 = smov 126   ;;  %vm393_vm0 = vcmask 1031168  }
   0xf   : > { %631 = vset.pattern.permute.xlu0 %v697_v0  ;;  %637 = vset.pattern.permute.xlu2 %v697_v0  ;;  %s699_s20 = smov 127   ;;  %v431_v11 = vld [vmem:[%s795_s5] sm:$0x3f]  ;;  %vm395_vm1 = vcmask 1043456   ;;  %vm386_vm2 = vcmask 1039360   ;;  %vm398_vm3 = vcmask 97280  }
  0x10   : > { %s802_s21 = smov (!%p335_p7, %s686_s21), 1  ;;  %v397_v19 = vld [vmem:[#allocation2] sm:$0x3f] }
  0x11   : > { %s578_s7 = sshll.u32 %s802_s21, 2  ;;  %s760_s11 = sshll.u32 %s802_s21, 3 }
  0x12   : > { %s338_s10 = scalar_lea.vmem %s790_s0, %s578_s7  ;;  %s591_s12 = sadd.s32 4, %s760_s11 }
  0x13   : > { %v370_v1 = vld [vmem:[%s338_s10] sm:$0xf]  ;;  %s350_s15 = scalar_lea.vmem %s792_s2, %s760_s11  ;;  %s359_s18 = scalar_lea.vmem %s793_s3, %s591_s12 }
  0x14   : > { %373 = vperm.xlu0 %631, %v370_v1   ;;  %v368_v2 = vld [vmem:[%s350_s15] sm:$0xf]  ;;  %s342_s26 = scalar_lea.vmem %s791_s1, %s760_s11  ;;  %s367_s7 = scalar_lea.vmem %s796_s6, %s760_s11 }
  0x15   : > { %v369_v3 = vld [vmem:[%s359_s18] sm:$0xf] }
  0x16   : > { %v424_v10 = vld [vmem:[%s342_s26] sm:$0x3f] }
  0x17   : > { %427 = vperm.xlu2 %637, %v424_v10  }
  0x1f   : > { %434 = vperm.xlu2 %637, %v431_v11  }
  0x71   : > { %v428_v21 = vpop.permute.xlu2 %427 }
  0x79   : > { %v435_v24 = vpop.permute.xlu2 %434 }
  0x86   : > { %v374_v4 = vpop.permute.xlu0 %373 }
  0x87   : > { %v376_v5 = vmul.f32 %v374_v4, %v368_v2  ;;  %v377_v6 = vmul.f32 %v374_v4, %v369_v3 }
  0x89   : > { %391 = vrot.lane.b32.xlu1 %v377_v6, %s698_s19  ;;  %389 = vrot.lane.b32.xlu0 %v376_v5, %s698_s19  ;;  %v381_v7 = vrot.slane %v377_v6, 4  ;;  %v380_v8 = vrot.slane %v376_v5, 4 }
  0x8b   : > { %v632_v9 = vpack.i.bf16 %v381_v7, %v380_v8 }
  0x91   : > { %633 = vrot.lane.b32.xlu1 %v632_v9, %s699_s20 }
  0xfb   : > { %v392_v12 = vpop.permute.xlu1 %391  ;;  %v390_v13 = vpop.permute.xlu0 %389 }
  0xfc   : > { %v394_v14 = vsel %vm393_vm0, %v390_v13, %v392_v12 }
  0xfd   : > { %585 = vmatpush.msk.msra.mxu0 %vm395_vm1, %v394_v14 }
 0x103   : > { %v634_v15 = vpop.permute.xlu1 %633 }
 0x104   : > { %v636_v16 = vunpack.i.h.bf16 %v634_v15  ;;  %v635_v17 = vunpack.i.l.bf16 %v634_v15 }
 0x106   : > { %v387_v18 = vsel %vm386_vm2, %v635_v17, %v636_v16 }
 0x107   : > { %v396_v20 = vsel %vm395_vm1, %v376_v5, %v387_v18 }
 0x108   : > { %419 = vmatpush.msra.mxu0 %v396_v20 }
 0x109   : > { %586 = vmatmul.msk.f32.vlgmr.msra.gmra.mxu0 %vm398_vm3, %v397_v19 }
 0x186   : > { %v421_v22 = vpop.f32.mrf.mxu0 }
 0x187   : > { %v430_v23 = vmul.f32 %v428_v21, %v421_v22 }
 0x189   : > { %v437_v25 = vadd.f32 %v435_v24, %v430_v23 }
 0x18b   : > { %438 = vst [vmem:[%s367_s7] sm:$0x3f] %v437_v25 }
 0x18c PF: > { %s17_s23 = sadd.s32 1, %s694_s23   ;;  %s797_s21 = smov %s690_s22 }
 0x18d   : > { %p14_p8 = scmp.ge.s32.totalorder %s17_s23, 4   ;;  %s798_s22 = smov %s800_s25 }
 0x18f   :  { %16 = sbr.rel (!%p14_p8) target bundleno = 2 (0x2), region = 88 }
 0x194   :  { %464 = vsyncpa [#allocation3], 1 }
 0x195   :  { %466 = vsyncpa [#allocation3 + $0x1], 1 }

</bundles_post_ra>
